<compile_context>
chip_gen: v7x
topology: tpu7x:2x2x1
jax: 0.10.0
libtpu: 0.0.40
codegen_flags: <defaults>
</compile_context>

<pallas_src>
import jax
import jax.numpy as jnp
from jax import lax
from jax.experimental import pallas as pl
from jax.experimental.pallas import tpu as pltpu
import numpy as np

EPS = 1e-5


def _round_up(x, m):
    return ((x + m - 1) // m) * m


def _pick_tile(l_out, max_tile_l):
    """Choose (TILE_L, L_pad): lane-dense tiles, fat enough to amortize per-step
    pipeline overhead, with bounded zero-padding waste."""
    l128 = _round_up(l_out, 128)
    if l128 <= max_tile_l:
        return l128, l128                      # single tile per batch
    max_nb = max(1, max_tile_l // 128)
    best_nb, best_pad = max_nb, _round_up(l_out, max_nb * 128)
    for nb in range(max_nb, max(1, max_nb // 2) - 1, -1):
        pad = _round_up(l_out, nb * 128)
        if pad < best_pad:
            best_nb, best_pad = nb, pad
    return best_nb * 128, best_pad


def _stats_kernel(p_ref, w_ref, sum_ref, sq_ref, sum_acc, sq_acc):
    """Per-batch partial BN stats of y = W @ patches (no cross-lane work per step)."""
    t = pl.program_id(1)

    @pl.when(t == 0)
    def _():
        sum_acc[...] = jnp.zeros_like(sum_acc)
        sq_acc[...] = jnp.zeros_like(sq_acc)

    # (C_out, CK) @ (CK, TILE_L) -> (C_out, TILE_L), f32 accumulation on the MXU.
    y = jnp.dot(w_ref[...], p_ref[0], preferred_element_type=jnp.float32)
    sum_acc[...] += y
    sq_acc[...] += y * y

    @pl.when(t == pl.num_programs(1) - 1)
    def _():
        # One cross-lane (XLU) reduction per batch, not per grid step.
        sum_ref[0] = jnp.sum(sum_acc[...], axis=-1, keepdims=True)
        sq_ref[0] = jnp.sum(sq_acc[...], axis=-1, keepdims=True)


def _norm_kernel(p_ref, w_ref, scale_ref, shift_ref, out_ref):
    """out = relu(scale * (W @ patches) + shift), emitted directly in NCL layout."""
    y = jnp.dot(w_ref[...], p_ref[0], preferred_element_type=jnp.float32)
    out_ref[0] = jnp.maximum(y * scale_ref[...] + shift_ref[...], 0.0)


def conv_block(x, weight, bias, gamma, beta, *, stride, padding, max_tile_l=8192):
    """ConvBlock forward.  x: (B, C_in, L) f32 -> (B, C_out, L_out) f32.

    NOTE: `bias` is accepted for API parity but never sent to the kernels: a
    per-channel constant cancels exactly under *training-mode* BatchNorm (the
    freshly-constructed nn.BatchNorm1d of the reference module).  If this block
    is ever run in eval mode (running stats), the bias must be re-introduced.
    """
    del bias
    B, C_in, L = x.shape
    C_out, _, K = weight.shape
    L_out = (L + 2 * padding - K) // stride + 1
    CK = C_in * K
    M = B * L_out                      # true element count for BN statistics

    # ---- glue: im2col in (B, CK, L_out) layout (CK on sublanes, L on lanes) ----
    x_pad = jnp.pad(x, ((0, 0), (0, 0), (padding, padding)))
    idx = jnp.arange(K)[:, None] + jnp.arange(L_out)[None, :] * stride   # (K, L_out)
    patches = x_pad[:, :, idx].reshape(B, CK, L_out)      # k fastest, matches w2d

    TILE_L, L_pad = _pick_tile(L_out, max_tile_l)
    if L_pad != L_out:
        # zero columns -> y == 0 (no bias) -> contribute nothing to the BN sums
        patches = jnp.pad(patches, ((0, 0), (0, 0), (0, L_pad - L_out)))
    patches = patches.astype(jnp.bfloat16)      # halve the dominant HBM traffic
    w2d = weight.reshape(C_out, CK).astype(jnp.bfloat16)

    grid = (B, L_pad // TILE_L)
    p_spec = pl.BlockSpec((1, CK, TILE_L), lambda b, t: (b, 0, t))
    w_spec = pl.BlockSpec((C_out, CK), lambda b, t: (0, 0))
    vec_spec = pl.BlockSpec((C_out, 1), lambda b, t: (0, 0))
    bstat_spec = pl.BlockSpec((1, C_out, 1), lambda b, t: (b, 0, 0))

    matmul_flops = 2 * B * L_pad * CK * C_out
    patch_bytes = 2 * B * L_pad * CK            # bf16

    # ---- pass 1: per-batch, per-channel sum / sum-of-squares over L ----
    sums, sqs = pl.pallas_call(
        _stats_kernel,
        grid=grid,
        in_specs=[p_spec, w_spec],
        out_specs=(bstat_spec, bstat_spec),
        out_shape=(jax.ShapeDtypeStruct((B, C_out, 1), jnp.float32),
                   jax.ShapeDtypeStruct((B, C_out, 1), jnp.float32)),
        scratch_shapes=[pltpu.VMEM((C_out, TILE_L), jnp.float32),
                        pltpu.VMEM((C_out, TILE_L), jnp.float32)],
        compiler_params=pltpu.CompilerParams(
            dimension_semantics=("parallel", "arbitrary")),
        cost_estimate=pl.CostEstimate(
            flops=matmul_flops, transcendentals=0,
            bytes_accessed=patch_bytes + 2 * CK * C_out + 8 * B * C_out),
    )(patches, w2d)

    # ---- tiny scalar math: fold BN into one affine per channel ----
    # TODO(synk): if |mean| >> std at very large M, switch to shifted / Welford
    # accumulation; lane-wide f32 partials already keep rounding error small.
    total = jnp.sum(sums[:, :, 0], axis=0)
    total_sq = jnp.sum(sqs[:, :, 0], axis=0)
    mean = total / M
    var = jnp.maximum(total_sq / M - mean * mean, 0.0)
    inv_std = lax.rsqrt(var + EPS)
    scale = (gamma * inv_std).reshape(C_out, 1).astype(jnp.float32)
    shift = (beta - mean * gamma * inv_std).reshape(C_out, 1).astype(jnp.float32)

    # ---- pass 2: recompute matmul, apply affine + ReLU, emit NCL layout ----
    out = pl.pallas_call(
        _norm_kernel,
        grid=grid,
        in_specs=[p_spec, w_spec, vec_spec, vec_spec],
        out_specs=pl.BlockSpec((1, C_out, TILE_L), lambda b, t: (b, 0, t)),
        out_shape=jax.ShapeDtypeStruct((B, C_out, L_pad), jnp.float32),
        compiler_params=pltpu.CompilerParams(
            dimension_semantics=("parallel", "parallel")),
        cost_estimate=pl.CostEstimate(
            flops=matmul_flops + 2 * B * L_pad * C_out, transcendentals=0,
            bytes_accessed=patch_bytes + 2 * CK * C_out
            + 4 * B * L_pad * C_out + 8 * C_out),
    )(patches, w2d, scale, shift)

    return out[:, :, :L_out]


def conv_block_ref(x, weight, bias, gamma, beta, *, stride, padding):
    """Pure-JAX reference mirroring PyTorch Conv1d + BatchNorm1d(train) + ReLU."""
    y = lax.conv_general_dilated(
        x, weight, window_strides=(stride,), padding=[(padding, padding)],
        dimension_numbers=("NCH", "OIH", "NCH"))
    y = y + bias[None, :, None]
    mean = jnp.mean(y, axis=(0, 2), keepdims=True)
    var = jnp.mean((y - mean) ** 2, axis=(0, 2), keepdims=True)
    y = (y - mean) / jnp.sqrt(var + EPS)
    y = y * gamma[None, :, None] + beta[None, :, None]
    return jnp.maximum(y, 0.0)


def _run_case(B, C_in, L, C_out, K, stride, padding, max_tile_l):
    key = jax.random.PRNGKey(0)
    kx, kw, kb, kg, kbe = jax.random.split(key, 5)
    x = jax.random.normal(kx, (B, C_in, L), dtype=jnp.float32)
    weight = jax.random.normal(kw, (C_out, C_in, K), dtype=jnp.float32) * 0.2
    bias = jax.random.normal(kb, (C_out,), dtype=jnp.float32) * 0.1
    gamma = 1.0 + 0.1 * jax.random.normal(kg, (C_out,), dtype=jnp.float32)
    beta = 0.1 * jax.random.normal(kbe, (C_out,), dtype=jnp.float32)

    out = conv_block(x, weight, bias, gamma, beta,
                     stride=stride, padding=padding, max_tile_l=max_tile_l)
    out = jax.block_until_ready(out)

    # Tight check: reference fed the same bf16-rounded inputs as the kernel,
    # isolating the kernel's matmul / stats / affine logic.
    ref_q = conv_block_ref(
        x.astype(jnp.bfloat16).astype(jnp.float32),
        weight.astype(jnp.bfloat16).astype(jnp.float32),
        bias, gamma, beta, stride=stride, padding=padding)
    np.testing.assert_allclose(np.asarray(out), np.asarray(ref_q),
                               rtol=1e-3, atol=1e-3)

    # Module-semantics check vs the pure-f32 reference; the extra slack is the
    # intentional bf16 rounding of the patch/weight traffic (perf-review item).
    ref = conv_block_ref(x, weight, bias, gamma, beta,
                         stride=stride, padding=padding)
    np.testing.assert_allclose(np.asarray(out), np.asarray(ref),
                               rtol=2e-2, atol=2e-2)


if __name__ == "__main__":
    # Small shape consistent with the module: Conv1d(4 -> 8, K=3, stride=2, pad=1).
    _run_case(B=2, C_in=4, L=16, C_out=8, K=3, stride=2, padding=1, max_tile_l=8192)
    # Multi-tile accumulation + padded-column coverage (small data, forced 128 tiles).
    _run_case(B=2, C_in=4, L=700, C_out=8, K=3, stride=2, padding=1, max_tile_l=128)
    print("KERNEL_OK")
</pallas_src>

<mosaic_0001>
module attributes {stable_mosaic.version = 11 : i64} {
  func.func @_stats_kernel(%arg0: i32, %arg1: i32, %arg2: memref<1x12x128xbf16, #tpu.memory_space<vmem>>, %arg3: memref<8x12xbf16, #tpu.memory_space<vmem>>, %arg4: memref<1x8x1xf32, #tpu.memory_space<vmem>>, %arg5: memref<1x8x1xf32, #tpu.memory_space<vmem>>, %arg6: memref<8x128xf32, #tpu.memory_space<vmem>>, %arg7: memref<8x128xf32, #tpu.memory_space<vmem>>) attributes {dimension_semantics = [#tpu.dimension_semantics<parallel>, #tpu.dimension_semantics<arbitrary>], iteration_bounds = array<i64: 2, 1>, scalar_prefetch = 0 : i64, scratch_operands = 2 : i64, tpu.core_type = #tpu.core_type<tc>, window_params = [{transform_indices = @transform_0, window_bounds = array<i64: 1, 12, 128>}, {pipeline_mode = #tpu.pipeline_mode<synchronous>, transform_indices = @transform_1, window_bounds = array<i64: 8, 12>}, {transform_indices = @transform_2, window_bounds = array<i64: 1, 8, 1>}, {transform_indices = @transform_3, window_bounds = array<i64: 1, 8, 1>}]} {
    %c0_i32 = arith.constant 0 : i32
    %0 = arith.cmpi eq, %arg1, %c0_i32 : i32
    %1 = arith.extui %0 : i1 to i32
    %c0_i32_0 = arith.constant 0 : i32
    %2 = arith.cmpi ne, %1, %c0_i32_0 : i32
    scf.if %2 {
      %cst_15 = arith.constant 0.000000e+00 : f32
      %17 = vector.broadcast %cst_15 : f32 to vector<8x128xf32>
      %c0_16 = arith.constant 0 : index
      %c0_17 = arith.constant 0 : index
      %18 = vector.load %arg6[%c0_16, %c0_17] : memref<8x128xf32, #tpu.memory_space<vmem>>, vector<8x128xf32>
      tpu.vector_store %arg6[%c0_16, %c0_17], %17 {strides = array<i32>} : memref<8x128xf32, #tpu.memory_space<vmem>>, vector<8x128xf32>,
      %cst_18 = arith.constant 0.000000e+00 : f32
      %19 = vector.broadcast %cst_18 : f32 to vector<8x128xf32>
      %c0_19 = arith.constant 0 : index
      %c0_20 = arith.constant 0 : index
      %20 = vector.load %arg7[%c0_19, %c0_20] : memref<8x128xf32, #tpu.memory_space<vmem>>, vector<8x128xf32>
      tpu.vector_store %arg7[%c0_19, %c0_20], %19 {strides = array<i32>} : memref<8x128xf32, #tpu.memory_space<vmem>>, vector<8x128xf32>,
    } else {
    }
    %c0 = arith.constant 0 : index
    %c0_1 = arith.constant 0 : index
    %3 = vector.load %arg3[%c0, %c0_1] : memref<8x12xbf16, #tpu.memory_space<vmem>>, vector<8x12xbf16>
    %c0_2 = arith.constant 0 : index
    %c0_3 = arith.constant 0 : index
    %c0_4 = arith.constant 0 : index
    %4 = vector.load %arg2[%c0_2, %c0_3, %c0_4] : memref<1x12x128xbf16, #tpu.memory_space<vmem>>, vector<1x12x128xbf16>
    %5 = vector.shape_cast %4 : vector<1x12x128xbf16> to vector<12x128xbf16>
    %cst = arith.constant dense<0.000000e+00> : vector<8x128xf32>
    %6 = tpu.matmul %3, %5, %cst {dimension_numbers = #tpu.dot_dimension_numbers<[1], [0], [0], [1], [0, 0, 1, 1], [], []>} : vector<8x12xbf16>, vector<12x128xbf16>, vector<8x128xf32> -> vector<8x128xf32>
    %c0_5 = arith.constant 0 : index
    %c0_6 = arith.constant 0 : index
    %7 = vector.load %arg6[%c0_5, %c0_6] : memref<8x128xf32, #tpu.memory_space<vmem>>, vector<8x128xf32>
    %8 = arith.addf %7, %6 : vector<8x128xf32>
    %c0_7 = arith.constant 0 : index
    %c0_8 = arith.constant 0 : index
    %9 = vector.load %arg6[%c0_7, %c0_8] : memref<8x128xf32, #tpu.memory_space<vmem>>, vector<8x128xf32>
    tpu.vector_store %arg6[%c0_7, %c0_8], %8 {strides = array<i32>} : memref<8x128xf32, #tpu.memory_space<vmem>>, vector<8x128xf32>,
    %c0_9 = arith.constant 0 : index
    %c0_10 = arith.constant 0 : index
    %10 = vector.load %arg7[%c0_9, %c0_10] : memref<8x128xf32, #tpu.memory_space<vmem>>, vector<8x128xf32>
    %11 = arith.mulf %6, %6 : vector<8x128xf32>
    %12 = arith.addf %10, %11 : vector<8x128xf32>
    %c0_11 = arith.constant 0 : index
    %c0_12 = arith.constant 0 : index
    %13 = vector.load %arg7[%c0_11, %c0_12] : memref<8x128xf32, #tpu.memory_space<vmem>>, vector<8x128xf32>
    tpu.vector_store %arg7[%c0_11, %c0_12], %12 {strides = array<i32>} : memref<8x128xf32, #tpu.memory_space<vmem>>, vector<8x128xf32>,
    %c0_i32_13 = arith.constant 0 : i32
    %14 = arith.cmpi eq, %arg1, %c0_i32_13 : i32
    %15 = arith.extui %14 : i1 to i32
    %c0_i32_14 = arith.constant 0 : i32
    %16 = arith.cmpi ne, %15, %c0_i32_14 : i32
    scf.if %16 {
      %c0_15 = arith.constant 0 : index
      %c0_16 = arith.constant 0 : index
      %17 = vector.load %arg6[%c0_15, %c0_16] : memref<8x128xf32, #tpu.memory_space<vmem>>, vector<8x128xf32>
      %cst_17 = arith.constant dense<0.000000e+00> : vector<8xf32>
      %18 = vector.multi_reduction <add>, %17, %cst_17 [1] : vector<8x128xf32> to vector<8xf32>
      %19 = vector.shape_cast %18 : vector<8xf32> to vector<8x1xf32>
      %c0_18 = arith.constant 0 : index
      %c0_19 = arith.constant 0 : index
      %c0_20 = arith.constant 0 : index
      %20 = vector.load %arg4[%c0_18, %c0_19, %c0_20] : memref<1x8x1xf32, #tpu.memory_space<vmem>>, vector<1x8x1xf32>
      %21 = vector.shape_cast %20 : vector<1x8x1xf32> to vector<8x1xf32>
      %22 = vector.shape_cast %19 : vector<8x1xf32> to vector<1x8x1xf32>
      tpu.vector_store %arg4[%c0_18, %c0_19, %c0_20], %22 {strides = array<i32>} : memref<1x8x1xf32, #tpu.memory_space<vmem>>, vector<1x8x1xf32>,
      %c0_21 = arith.constant 0 : index
      %c0_22 = arith.constant 0 : index
      %23 = vector.load %arg7[%c0_21, %c0_22] : memref<8x128xf32, #tpu.memory_space<vmem>>, vector<8x128xf32>
      %cst_23 = arith.constant dense<0.000000e+00> : vector<8xf32>
      %24 = vector.multi_reduction <add>, %23, %cst_23 [1] : vector<8x128xf32> to vector<8xf32>
      %25 = vector.shape_cast %24 : vector<8xf32> to vector<8x1xf32>
      %c0_24 = arith.constant 0 : index
      %c0_25 = arith.constant 0 : index
      %c0_26 = arith.constant 0 : index
      %26 = vector.load %arg5[%c0_24, %c0_25, %c0_26] : memref<1x8x1xf32, #tpu.memory_space<vmem>>, vector<1x8x1xf32>
      %27 = vector.shape_cast %26 : vector<1x8x1xf32> to vector<8x1xf32>
      %28 = vector.shape_cast %25 : vector<8x1xf32> to vector<1x8x1xf32>
      tpu.vector_store %arg5[%c0_24, %c0_25, %c0_26], %28 {strides = array<i32>} : memref<1x8x1xf32, #tpu.memory_space<vmem>>, vector<1x8x1xf32>,
    } else {
    }
    return
  }
  func.func @transform_0(%arg0: i32, %arg1: i32) -> (i32, i32, i32) {
    %c0_i32 = arith.constant 0 : i32
    %c0_i32_0 = arith.constant 0 : i32
    return %arg0, %c0_i32, %arg1 : i32, i32, i32
  }
  func.func @transform_1(%arg0: i32, %arg1: i32) -> (i32, i32) {
    %c0_i32 = arith.constant 0 : i32
    %c0_i32_0 = arith.constant 0 : i32
    %c0_i32_1 = arith.constant 0 : i32
    return %c0_i32, %c0_i32_0 : i32, i32
  }
  func.func @transform_2(%arg0: i32, %arg1: i32) -> (i32, i32, i32) {
    %c0_i32 = arith.constant 0 : i32
    %c0_i32_0 = arith.constant 0 : i32
    %c0_i32_1 = arith.constant 0 : i32
    return %arg0, %c0_i32, %c0_i32_0 : i32, i32, i32
  }
  func.func @transform_3(%arg0: i32, %arg1: i32) -> (i32, i32, i32) {
    %c0_i32 = arith.constant 0 : i32
    %c0_i32_0 = arith.constant 0 : i32
    %c0_i32_1 = arith.constant 0 : i32
    return %arg0, %c0_i32, %c0_i32_0 : i32, i32, i32
  }
}

</mosaic_0001>

<bundles_post_ra>
// kernel: tpu_custom_call.1
= control target key start
LH: loop header
LB: loop body
LE: loop exit
PB: predicated region body
PF: predicated region fallthrough
CT: control target
= control target key end

     0   :  { %s478_s12 = smov 0   ;;  %s480_s13 = smov 0   ;;  %s517_s0 = inlined_call_operand.vmem [shape: bf16[2,12,128], index: 0, kind: input, shape index: {}]   ;;  %s518_s1 = inlined_call_operand.vmem [shape: bf16[8,12], index: 1, kind: input, shape index: {}]   ;;  %s519_s2 = inlined_call_operand.vmem [shape: f32[2,8,1], index: 2, kind: output, shape index: {0}]   ;;  %s520_s3 = inlined_call_operand.vmem [shape: f32[2,8,1], index: 3, kind: output, shape index: {1}]  }
   0x1   :  { %s482_s14 = smov 0  }
   0x2 LB: > { %s26_s15 = sadd.s32 1, %s450_s13  ;;  %p387_p0 = scmp.ge.s32.totalorder %s454_s14, 1  ;;  %s454_s14 = sphi %s482_s14, %s14_s14   ;;  %s450_s13 = sphi %s480_s13, %s522_s13   ;;  %s446_s12 = sphi %s478_s12, %s521_s12  }
   0x3   : > { %p28_p1 = scmp.ge.s32.totalorder %s26_s15, 2  ;;  %p157_p2 = scmp.lt.s32.totalorder %s454_s14, 3 }
   0x5   : > { %s524_s15 = smov (%p28_p1, %s26_s15), 0  ;;  %p158_p3 = pnand %p387_p0, %p157_p2 }
   0x6   : > { %p187_p4 = scmp.lt.s32.totalorder (!%p158_p3), %s446_s12, 1  ;;  %v456_v0 = vmov (!%p158_p3), 0.0   ;;  %vm457_vm0 = vmmov (!%p158_p3), 0   ;;  %vm222_vm1 = vcmask (!%p158_p3), 1045504   ;;  %v210_v3 = vld [vmem:[%s518_s1] sm:$0xf] (!%p158_p3) }
   0x7   : > { %161 = sbr.rel (%p158_p3) target bundleno = 381 (0x17d), region = 28  ;;  %399 = vmatprep.subr.bf16.mxu0 (!%p158_p3), %v456_v0  ;;  %401 = vmatprep.mubr.msk.bf16.mxu0 (!%p158_p3), %vm457_vm0, %v456_v0  ;;  %vm218_vm2 = vcmask (!%p158_p3), 97280   ;;  %vm279_vm3 = vcmask (!%p158_p3), 7168  }
   0xe   : > { %s526_s12 = smov (!%p187_p4, %s446_s12), 1 }
   0xf   : > { %s396_s16 = sshll.u32 %s526_s12, 3 }
  0x10   : > { %s194_s19 = scalar_lea.vmem %s517_s0, %s396_s16  ;;  %s198_s24 = scalar_lea.vmem %s519_s2, %s396_s16 }
  0x11   : > { %v431_v1 = vld [vmem:[%s194_s19] sm:$0x3f]   ;;  %s202_s27 = scalar_lea.vmem %s520_s3, %s396_s16 }
  0x12   : > { %v224_v2 = vsel %vm222_vm1, %v431_v1, 0 }
  0x13   : > { %400 = vmatpush3.bf16.msra.mxu0 %v224_v2 }
  0x16   : > { %402 = vmatmul.mubr.msk.bf16.vlgmr.msra.gmra.mrb[0].mxu0 %vm218_vm2, %v210_v3 }
  0xe9   : > { %v260_v4 = vpop.f32.mrb[0].mxu0 }
  0xea   : > { %277 = vadd.xlane.f32.xlu0 %v260_v4  ;;  %v403_v5 = vpop.f32.mrb[1].mxu0  ;;  %v270_v8 = vmul.f32 %v260_v4, %v260_v4 }
  0xeb   : > { %v263_v6 = vpop.f32.mrb[2].mxu0 }
  0xec   : > { %v404_v7 = vpop.f32.mrb[3].mxu0 }
  0xee   : > { %282 = vadd.xlane.f32.xlu0 %v270_v8 }
 0x177   : > { %v278_v9 = vpop.xlane.xlu0 %277 }
 0x178   : > { %280 = vst.msk [vmem:[%s198_s24] sm:$0xff] %vm279_vm3, %v278_v9 }
 0x17b   : > { %v283_v10 = vpop.xlane.xlu0 %282 }
 0x17c   : > { %284 = vst.msk [vmem:[%s202_s27] sm:$0xff] %vm279_vm3, %v283_v10 }
 0x17d PF: > { %s14_s14 = sadd.s32 1, %s454_s14   ;;  %s521_s12 = smov %s450_s13 }
 0x17e   : > { %p11_p5 = scmp.ge.s32.totalorder %s14_s14, 4   ;;  %s522_s13 = smov %s524_s15 }
 0x180   :  { %13 = sbr.rel (!%p11_p5) target bundleno = 2 (0x2), region = 78 }

</bundles_post_ra>
